<compile_context>
chip_gen: v7x
topology: tpu7x:2x2x1
jax: 0.10.0
libtpu: 0.0.40
codegen_flags: <defaults>
</compile_context>

<pallas_src>
import math

import jax
import jax.numpy as jnp
from jax import lax
from jax.experimental import pallas as pl
from jax.experimental.pallas import tpu as pltpu


# ----------------------------------------------------------------------------
# Pallas kernel: fused Embed forward for ONE network (one grid step).
#   h   = relu(x @ W1 + b1)
#   y   = h @ W2 + b2
#   out = y * rsqrt(sum(y^2, axis=1, keepdims=True) + eps)
# Matmuls use bf16 operands with f32 accumulation (MXU); everything else f32.
# ----------------------------------------------------------------------------
def _embed_kernel(x_ref, w1_ref, b1_ref, w2_ref, b2_ref, o_ref):
    x = x_ref[0]                                   # (Bp, Dmax)   f32
    w1 = w1_ref[0]                                 # (Dmax, Dout) f32
    b1 = b1_ref[0]                                 # (1, Dout)    f32
    w2 = w2_ref[0]                                 # (Dout, Dout) f32
    b2 = b2_ref[0]                                 # (1, Dout)    f32

    # First linear + ReLU.  bf16 MXU inputs, f32 accumulation.
    h = jnp.dot(x.astype(jnp.bfloat16), w1.astype(jnp.bfloat16),
                preferred_element_type=jnp.float32) + b1
    h = jnp.maximum(h, 0.0)                        # ReLU (VPU, f32)

    # Second linear.
    y = jnp.dot(h.astype(jnp.bfloat16), w2.astype(jnp.bfloat16),
                preferred_element_type=jnp.float32) + b2

    # L2 normalization along the feature axis:
    #   inv = rsqrt(sum(y^2) + eps)  (XLU lane-reduce + EUP rsqrt)
    ss = jnp.sum(y * y, axis=1, keepdims=True)     # (Bp, 1)
    inv = lax.rsqrt(ss + 1e-12)
    o_ref[0] = y * inv


def _round_up(v, m):
    return ((v + m - 1) // m) * m


def dmcl_embed_forward(xs, params, feat_dim):
    """Runs all projection heads in one gridded Pallas call.

    xs     : list of (B, rep_dim[i]) float32 arrays (one per network)
    params : list of (w1 (rep_dim[i], feat_dim), b1 (1, feat_dim),
                      w2 (feat_dim, feat_dim),   b2 (1, feat_dim))
    returns: list of (B, feat_dim) float32, L2-normalized along axis 1.
    """
    assert feat_dim % 128 == 0, "feat_dim must be lane-dense (multiple of 128)"
    n = len(xs)
    b = xs[0].shape[0]
    d_max = _round_up(max(x.shape[1] for x in xs), 128)   # lane-align K
    b_pad = _round_up(max(b, 16), 16)                     # bf16 sublane tile

    # Zero-pad inputs / first-layer weights to a common (b_pad, d_max) /
    # (d_max, feat_dim) so they stack; padding contributes 0 to the matmul.
    xs_p, w1s, b1s, w2s, b2s = [], [], [], [], []
    for x, (w1, b1, w2, b2) in zip(xs, params):
        din = x.shape[1]
        xs_p.append(jnp.pad(x, ((0, b_pad - b), (0, d_max - din))))
        w1s.append(jnp.pad(w1, ((0, d_max - din), (0, 0))))
        b1s.append(b1)
        w2s.append(w2)
        b2s.append(b2)

    X = jnp.stack(xs_p)    # (N, Bp, Dmax)
    W1 = jnp.stack(w1s)    # (N, Dmax, Dout)
    B1 = jnp.stack(b1s)    # (N, 1, Dout)
    W2 = jnp.stack(w2s)    # (N, Dout, Dout)
    B2 = jnp.stack(b2s)    # (N, 1, Dout)

    out = pl.pallas_call(
        _embed_kernel,
        out_shape=jax.ShapeDtypeStruct((n, b_pad, feat_dim), jnp.float32),
        grid=(n,),
        in_specs=[
            pl.BlockSpec((1, b_pad, d_max), lambda i: (i, 0, 0)),
            pl.BlockSpec((1, d_max, feat_dim), lambda i: (i, 0, 0)),
            pl.BlockSpec((1, 1, feat_dim), lambda i: (i, 0, 0)),
            pl.BlockSpec((1, feat_dim, feat_dim), lambda i: (i, 0, 0)),
            pl.BlockSpec((1, 1, feat_dim), lambda i: (i, 0, 0)),
        ],
        out_specs=pl.BlockSpec((1, b_pad, feat_dim), lambda i: (i, 0, 0)),
        compiler_params=pltpu.CompilerParams(
            dimension_semantics=("parallel",)),   # independent per network
    )(X, W1, B1, W2, B2)

    return [out[i, :b, :] for i in range(n)]


# ----------------------------------------------------------------------------
# DMCL_Loss (JAX/Pallas version)
# ----------------------------------------------------------------------------
class Args:
    def __init__(self, number_net, rep_dim, feat_dim):
        self.number_net = number_net
        self.rep_dim = rep_dim
        self.feat_dim = feat_dim


def _init_linear(key, fan_in, fan_out):
    """Deterministic PyTorch-style Linear init (kaiming-uniform bound)."""
    kw, kb = jax.random.split(key)
    bound = 1.0 / math.sqrt(fan_in)
    # PyTorch stores weight as (out, in); pre-transposed to (in, out) so the
    # kernel computes x @ W directly.
    w = jax.random.uniform(kw, (fan_in, fan_out), jnp.float32, -bound, bound)
    b = jax.random.uniform(kb, (1, fan_out), jnp.float32, -bound, bound)
    return w, b


class DMCL_Loss:
    def __init__(self, args, key):
        self.args = args
        self.params = []
        for i in range(args.number_net):
            key, k1, k2 = jax.random.split(key, 3)
            w1, b1 = _init_linear(k1, args.rep_dim[i], args.feat_dim)
            w2, b2 = _init_linear(k2, args.feat_dim, args.feat_dim)
            self.params.append((w1, b1, w2, b2))

    def forward(self, embeddings, labels):
        # All per-network projection heads in a single fused Pallas call.
        projected = dmcl_embed_forward(embeddings, self.params,
                                       self.args.feat_dim)
        # TODO(synk): self.contrast(projected, labels) -> (vcl_loss,
        #             soft_vcl_loss): SupMCL is not defined in the provided
        #             reference, so the contrastive reduction is omitted.
        return projected


def _embed_reference(x, w1, b1, w2, b2):
    """Pure-JAX f32 reference for the projection head."""
    h = jnp.maximum(x @ w1 + b1, 0.0)
    y = h @ w2 + b2
    norm = jnp.sqrt(jnp.sum(y * y, axis=1, keepdims=True))
    return y / norm


# ----------------------------------------------------------------------------
if __name__ == "__main__":
    B = 8
    args = Args(number_net=2, rep_dim=[256, 128], feat_dim=128)

    key = jax.random.PRNGKey(0)
    key, k_loss, kx0, kx1, kl = jax.random.split(key, 5)

    loss_mod = DMCL_Loss(args, k_loss)

    embeddings = [
        jax.random.normal(kx0, (B, args.rep_dim[0]), jnp.float32),
        jax.random.normal(kx1, (B, args.rep_dim[1]), jnp.float32),
    ]
    labels = jax.random.randint(kl, (B,), 0, 10)  # unused (consumed by SupMCL)

    outs = loss_mod.forward(embeddings, labels)
    outs = [jax.block_until_ready(o) for o in outs]

    ok = True
    for i, o in enumerate(outs):
        # Outputs must be L2-normalized along axis 1.
        norms = jnp.sqrt(jnp.sum(o * o, axis=1))
        ok &= bool(jnp.allclose(norms, 1.0, atol=1e-3))
        # And match the f32 reference to within bf16-matmul tolerance.
        ref = _embed_reference(embeddings[i], *loss_mod.params[i])
        ok &= bool(jnp.allclose(o, ref, atol=2e-2, rtol=2e-2))

    assert ok, "mismatch vs. reference"
    print("KERNEL_OK")
</pallas_src>

<mosaic_0001>
module attributes {stable_mosaic.version = 11 : i64} {
  func.func @_embed_kernel(%arg0: i32, %arg1: memref<1x16x256xf32, #tpu.memory_space<vmem>>, %arg2: memref<1x256x128xf32, #tpu.memory_space<vmem>>, %arg3: memref<1x1x128xf32, #tpu.memory_space<vmem>>, %arg4: memref<1x128x128xf32, #tpu.memory_space<vmem>>, %arg5: memref<1x1x128xf32, #tpu.memory_space<vmem>>, %arg6: memref<1x16x128xf32, #tpu.memory_space<vmem>>) attributes {dimension_semantics = [#tpu.dimension_semantics<parallel>], iteration_bounds = array<i64: 2>, scalar_prefetch = 0 : i64, scratch_operands = 0 : i64, tpu.core_type = #tpu.core_type<tc>, window_params = [{transform_indices = @transform_0, window_bounds = array<i64: 1, 16, 256>}, {transform_indices = @transform_1, window_bounds = array<i64: 1, 256, 128>}, {transform_indices = @transform_2, window_bounds = array<i64: 1, 1, 128>}, {transform_indices = @transform_3, window_bounds = array<i64: 1, 128, 128>}, {transform_indices = @transform_4, window_bounds = array<i64: 1, 1, 128>}, {transform_indices = @transform_5, window_bounds = array<i64: 1, 16, 128>}]} {
    %c0 = arith.constant 0 : index
    %c0_0 = arith.constant 0 : index
    %c0_1 = arith.constant 0 : index
    %0 = vector.load %arg1[%c0, %c0_0, %c0_1] : memref<1x16x256xf32, #tpu.memory_space<vmem>>, vector<1x16x256xf32>
    %1 = vector.shape_cast %0 : vector<1x16x256xf32> to vector<16x256xf32>
    %c0_2 = arith.constant 0 : index
    %c0_3 = arith.constant 0 : index
    %c0_4 = arith.constant 0 : index
    %2 = vector.load %arg2[%c0_2, %c0_3, %c0_4] : memref<1x256x128xf32, #tpu.memory_space<vmem>>, vector<1x256x128xf32>
    %3 = vector.shape_cast %2 : vector<1x256x128xf32> to vector<256x128xf32>
    %c0_5 = arith.constant 0 : index
    %c0_6 = arith.constant 0 : index
    %c0_7 = arith.constant 0 : index
    %4 = vector.load %arg3[%c0_5, %c0_6, %c0_7] : memref<1x1x128xf32, #tpu.memory_space<vmem>>, vector<1x1x128xf32>
    %5 = vector.shape_cast %4 : vector<1x1x128xf32> to vector<1x128xf32>
    %c0_8 = arith.constant 0 : index
    %c0_9 = arith.constant 0 : index
    %c0_10 = arith.constant 0 : index
    %6 = vector.load %arg4[%c0_8, %c0_9, %c0_10] : memref<1x128x128xf32, #tpu.memory_space<vmem>>, vector<1x128x128xf32>
    %7 = vector.shape_cast %6 : vector<1x128x128xf32> to vector<128x128xf32>
    %c0_11 = arith.constant 0 : index
    %c0_12 = arith.constant 0 : index
    %c0_13 = arith.constant 0 : index
    %8 = vector.load %arg5[%c0_11, %c0_12, %c0_13] : memref<1x1x128xf32, #tpu.memory_space<vmem>>, vector<1x1x128xf32>
    %9 = vector.shape_cast %8 : vector<1x1x128xf32> to vector<1x128xf32>
    %10 = arith.truncf %1 : vector<16x256xf32> to vector<16x256xbf16>
    %11 = arith.truncf %3 : vector<256x128xf32> to vector<256x128xbf16>
    %cst = arith.constant dense<0.000000e+00> : vector<16x128xf32>
    %12 = tpu.matmul %10, %11, %cst {dimension_numbers = #tpu.dot_dimension_numbers<[1], [0], [0], [1], [0, 0, 1, 1], [], []>} : vector<16x256xbf16>, vector<256x128xbf16>, vector<16x128xf32> -> vector<16x128xf32>
    %13 = vector.broadcast %5 : vector<1x128xf32> to vector<16x128xf32>
    %14 = arith.addf %12, %13 : vector<16x128xf32>
    %cst_14 = arith.constant 0.000000e+00 : f32
    %15 = vector.broadcast %cst_14 : f32 to vector<16x128xf32>
    %16 = arith.maximumf %14, %15 : vector<16x128xf32>
    %17 = arith.truncf %16 : vector<16x128xf32> to vector<16x128xbf16>
    %18 = arith.truncf %7 : vector<128x128xf32> to vector<128x128xbf16>
    %cst_15 = arith.constant dense<0.000000e+00> : vector<16x128xf32>
    %19 = tpu.matmul %17, %18, %cst_15 {dimension_numbers = #tpu.dot_dimension_numbers<[1], [0], [0], [1], [0, 0, 1, 1], [], []>} : vector<16x128xbf16>, vector<128x128xbf16>, vector<16x128xf32> -> vector<16x128xf32>
    %20 = vector.broadcast %9 : vector<1x128xf32> to vector<16x128xf32>
    %21 = arith.addf %19, %20 : vector<16x128xf32>
    %22 = arith.mulf %21, %21 : vector<16x128xf32>
    %cst_16 = arith.constant dense<0.000000e+00> : vector<16xf32>
    %23 = vector.multi_reduction <add>, %22, %cst_16 [1] : vector<16x128xf32> to vector<16xf32>
    %24 = vector.shape_cast %23 : vector<16xf32> to vector<16x1xf32>
    %cst_17 = arith.constant 9.99999996E-13 : f32
    %25 = vector.broadcast %cst_17 : f32 to vector<16x1xf32>
    %26 = arith.addf %24, %25 : vector<16x1xf32>
    %27 = math.rsqrt %26 : vector<16x1xf32>
    %28 = vector.broadcast %27 : vector<16x1xf32> to vector<16x128xf32>
    %29 = arith.mulf %21, %28 : vector<16x128xf32>
    %c0_18 = arith.constant 0 : index
    %c0_19 = arith.constant 0 : index
    %c0_20 = arith.constant 0 : index
    %30 = vector.load %arg6[%c0_18, %c0_19, %c0_20] : memref<1x16x128xf32, #tpu.memory_space<vmem>>, vector<1x16x128xf32>
    %31 = vector.shape_cast %30 : vector<1x16x128xf32> to vector<16x128xf32>
    %32 = vector.shape_cast %29 : vector<16x128xf32> to vector<1x16x128xf32>
    tpu.vector_store %arg6[%c0_18, %c0_19, %c0_20], %32 {strides = array<i32>} : memref<1x16x128xf32, #tpu.memory_space<vmem>>, vector<1x16x128xf32>,
    return
  }
  func.func @transform_0(%arg0: i32) -> (i32, i32, i32) {
    %c0_i32 = arith.constant 0 : i32
    %c0_i32_0 = arith.constant 0 : i32
    %c0_i32_1 = arith.constant 0 : i32
    return %arg0, %c0_i32, %c0_i32_0 : i32, i32, i32
  }
  func.func @transform_1(%arg0: i32) -> (i32, i32, i32) {
    %c0_i32 = arith.constant 0 : i32
    %c0_i32_0 = arith.constant 0 : i32
    %c0_i32_1 = arith.constant 0 : i32
    return %arg0, %c0_i32, %c0_i32_0 : i32, i32, i32
  }
  func.func @transform_2(%arg0: i32) -> (i32, i32, i32) {
    %c0_i32 = arith.constant 0 : i32
    %c0_i32_0 = arith.constant 0 : i32
    %c0_i32_1 = arith.constant 0 : i32
    return %arg0, %c0_i32, %c0_i32_0 : i32, i32, i32
  }
  func.func @transform_3(%arg0: i32) -> (i32, i32, i32) {
    %c0_i32 = arith.constant 0 : i32
    %c0_i32_0 = arith.constant 0 : i32
    %c0_i32_1 = arith.constant 0 : i32
    return %arg0, %c0_i32, %c0_i32_0 : i32, i32, i32
  }
  func.func @transform_4(%arg0: i32) -> (i32, i32, i32) {
    %c0_i32 = arith.constant 0 : i32
    %c0_i32_0 = arith.constant 0 : i32
    %c0_i32_1 = arith.constant 0 : i32
    return %arg0, %c0_i32, %c0_i32_0 : i32, i32, i32
  }
  func.func @transform_5(%arg0: i32) -> (i32, i32, i32) {
    %c0_i32 = arith.constant 0 : i32
    %c0_i32_0 = arith.constant 0 : i32
    %c0_i32_1 = arith.constant 0 : i32
    return %arg0, %c0_i32, %c0_i32_0 : i32, i32, i32
  }
}

</mosaic_0001>

<bundles_post_ra>
// kernel: tpu_custom_call.1
= control target key start
LH: loop header
LB: loop body
LE: loop exit
PB: predicated region body
PF: predicated region fallthrough
CT: control target
= control target key end

     0   :  { %s1364_s0 = inlined_call_operand.hbm [shape: f32[2,16,256], index: 0, kind: input, shape index: {}]   ;;  %s1365_s1 = inlined_call_operand.hbm [shape: f32[2,256,128], index: 1, kind: input, shape index: {}]   ;;  %s1366_s2 = inlined_call_operand.vmem [shape: f32[2,1,128], index: 2, kind: input, shape index: {}]   ;;  %s1367_s3 = inlined_call_operand.hbm [shape: f32[2,128,128], index: 3, kind: input, shape index: {}]   ;;  %s1368_s4 = inlined_call_operand.vmem [shape: f32[2,1,128], index: 4, kind: input, shape index: {}]   ;;  %s1369_s5 = inlined_call_operand.hbm [shape: f32[2,16,128], index: 5, kind: output, shape index: {}]  }
   0x1   :  { %1374 = sst [smem:[#allocation13_spill]] %s1364_s0 }
   0x2   :  { %1375 = sst [smem:[#allocation14_spill]] %s1365_s1 }
   0x3   :  { %10 = vsyncpa [#allocation3], 0 }
   0x4   :  { %12 = vsyncpa [#allocation3 + $0x1], 0 }
   0x5   :  { %13 = vsyncpa [#allocation6], 0 }
   0x6   :  { %15 = vsyncpa [#allocation6 + $0x1], 0 }
   0x7   :  { %16 = vsyncpa [#allocation4], 0 }
   0x8   :  { %18 = vsyncpa [#allocation4 + $0x1], 0  ;;  %s1039_s18 = smov 0   ;;  %s1041_s19 = smov 0  }
   0x9   :  { %s1043_s20 = smov 0   ;;  %s1045_s21 = smov 0  }
   0xa LB: > { %s1060_s22 = sadd.s32 4294967295, %s995_s21   ;;  %s688_s23 = sadd.s32 4294967294, %s995_s21   ;;  %s995_s21 = sphi %s1045_s21, %s1397_s21   ;;  %s991_s20 = sphi %s1043_s20, %s1396_s20   ;;  %s987_s19 = sphi %s1041_s19, %s1395_s19   ;;  %s983_s18 = sphi %s1039_s18, %s1394_s18  }
   0xb   : > { %s1064_s24 = sadd.s32 1, %s995_s21   ;;  %s31_s25 = sadd.s32 1, %s991_s20 }
   0xc   : > { %s28_s26 = ssub.s32 %s995_s21, %s1064_s24  ;;  %p38_p0 = scmp.ne.s32.totalorder %s991_s20, %s987_s19 }
   0xd   : > { %p29_p1 = scmp.eq.s32.totalorder %s28_s26, 0  ;;  %p39_p2 = scmp.eq.s32.totalorder %s995_s21, 0 }
   0xe   : > { %p44_p3 = scmp.ne.s32.totalorder %s987_s19, %s983_s18  ;;  %p45_p4 = scmp.eq.s32.totalorder %s1060_s22, 0 }
   0xf   : > { %s1076_s27 = scalar_select %p29_p1, %s991_s20, %s31_s25  }
  0x10   : > { %p40_p5 = por %p39_p2, %p38_p0  ;;  %p1078_p6 = por %p45_p4, %p44_p3 }
  0x11   : > { %1376 = sst [smem:[#allocation12_spill]] %s1076_s27  ;;  %p172_p7 = scmp.eq.s32.totalorder %s1060_s22, 1 }
  0x12   : > { %s1377_s28 = scalar_select %p1078_p6, 1, 0 }
  0x13   : > { %p178_p8 = scmp.eq.s32.totalorder %s688_s23, 1  ;;  %p789_p10 = scmp.lt.s32.totalorder %s995_s21, 2 }
  0x14   : > { %p1085_p11 = por %p172_p7, %p38_p0  ;;  %s1094_s6 = sand.u32 1, %s991_s20  }
  0x15   : > { %p1089_p12 = por %p178_p8, %p44_p3  ;;  %p1096_p13 = pnand %p789_p10, %p40_p5 }
  0x16   : > { %s1378_s29 = scalar_select %p1085_p11, 1, 0 }
  0x17   : > { %s1379_s30 = scalar_select %p1089_p12, 1, 0 }
  0x18   : > { %s219_s8 = sand.u32 1, %s995_s21   ;;  %s694_s9 = sshll.u32 %s1094_s6, 8 }
  0x19   : > { %s713_s10 = sshll.u32 %s995_s21, 12  ;;  %s1381_s1 = sld [smem:[#allocation14_spill]] }
  0x1a   : > { %s223_s14 = scalar_lea.vmem [#allocation5], %s694_s9  ;;  %s1111_s16 = scalar_lea.sflag [#allocation6], %s219_s8 }
  0x1b   : > { %s230_s15 = sshll.u32 %s223_s14, 4  ;;  %p1117_p2 = pneg %p1096_p13  ;;  %s1108_s15 = int_to_ptr.vmem [resolvable:$true] %s230_s15 }
  0x1f   : > { %s1106_s13 = scalar_lea.hbm %s1381_s1, %s713_s10  ;;  %s840_s9 = scalar_lea.hbm %s1381_s1, 8192 }
  0x20   : > { %s835_s17 = scalar_lea.hbm %s1106_s13, 4096  ;;  %p841_p5 = scmp.lt.u32.totalorder %s1106_s13, %s1381_s1 }
  0x21   : > { %p836_p1 = scmp.ne.s32.totalorder %s1106_s13, %s835_s17  ;;  %p842_p7 = scmp.lt.u32.totalorder %s840_s9, %s835_s17 }
  0x22   : > { %p844_p10 = scmp.lt.u32.totalorder %s835_s17, %s1106_s13 }
  0x23   : > { %p838_p3 = pnand %p1117_p2, %p836_p1  ;;  %p843_p8 = por %p842_p7, %p841_p5 }
  0x25   : > { %p839_p4 = pneg %p838_p3  ;;  %p845_p9 = por %p844_p10, %p843_p8 }
  0x27   : > { %p846_p0 = pnand %p845_p9, %p839_p4 }
  0x29   : > { %849 = shalt.err (!%p846_p0)
}
  0x2a   : > { %s850_s8 = scalar_lea.vmem %s1108_s15, 4096  ;;  %s997_s12 = smov [#allocation5]  }
  0x2b   : > { %p851_p1 = scmp.ne.s32.totalorder %s1108_s15, %s850_s8  ;;  %s855_s14 = sshll.u32 %s997_s12, 4  ;;  %s856_s14 = int_to_ptr.vmem [resolvable:$false] %s855_s14 }
  0x2c   : > { %s857_s25 = scalar_lea.vmem %s856_s14, 8192  ;;  %p858_p11 = scmp.lt.s32.totalorder %s1108_s15, %s856_s14 }
  0x2d   : > { %p853_p3 = pnand %p851_p1, %p1117_p2  ;;  %p859_p6 = scmp.lt.s32.totalorder %s857_s25, %s850_s8 }
  0x2f   : > { %p854_p12 = pneg %p853_p3  ;;  %p860_p5 = por %p859_p6, %p858_p11 }
  0x31   : > { %p861_p7 = pnand %p860_p5, %p854_p12 }
  0x33   : > { %864 = shalt.err (!%p861_p7)
}
  0x34   : > { %s1372_s17 = smov 128   ;;  %s1373_s26 = smov 8  }
  0x35   : > { %781 = dma.hbm_to_vmem [thread:$0]  (!%p1096_p13), %s1106_s13, 4096, %s1108_s15, %s1111_s16, %s1372_s17, %s1372_s17, %s1373_s26  }
  0x36   : > { %p271_p6 = scmp.lt.s32.totalorder %s995_s21, 3  ;;  %s691_s9 = sshll.u32 %s1094_s6, 5 }
  0x37   : > { %s712_s10 = sshll.u32 %s995_s21, 9  ;;  %p1383_p9 = scmp.ge.s32.totalorder %s995_s21, 1 }
  0x38   : > { %s1385_s0 = sld [smem:[#allocation13_spill]]  ;;  %s202_s25 = scalar_lea.vmem [#allocation2], %s691_s9 }
  0x39   : > { %p1149_p11 = pnand %p1383_p9, %p271_p6  ;;  %s209_s1 = sshll.u32 %s202_s25, 4  ;;  %s1158_s1 = int_to_ptr.vmem [resolvable:$true] %s209_s1 }
  0x3a   : > { %s697_s13 = sshll.u32 %s1094_s6, 7  ;;  %s199_s15 = scalar_lea.sflag [#allocation3], %s1094_s6 }
  0x3b   : > { %s1384_s11 = scalar_select %p1149_p11, 1, 0 }
  0x3e   : > { %s1156_s14 = scalar_lea.hbm %s1385_s0, %s712_s10  ;;  %s870_s10 = scalar_lea.hbm %s1385_s0, 1024 }
  0x3f   : > { %s865_s17 = scalar_lea.hbm %s1156_s14, 512  ;;  %p871_p8 = scmp.lt.u32.totalorder %s1156_s14, %s1385_s0 }
  0x40   : > { %p866_p12 = scmp.ne.s32.totalorder %s1156_s14, %s865_s17  ;;  %p872_p10 = scmp.lt.u32.totalorder %s870_s10, %s865_s17 }
  0x41   : > { %p874_p3 = scmp.lt.u32.totalorder %s865_s17, %s1156_s14 }
  0x42   : > { %p868_p0 = pnand %p866_p12, %p1117_p2  ;;  %p873_p1 = por %p872_p10, %p871_p8 }
  0x44   : > { %p869_p4 = pneg %p868_p0  ;;  %p875_p5 = por %p874_p3, %p873_p1 }
  0x46   : > { %p876_p7 = pnand %p875_p5, %p869_p4 }
  0x48   : > { %879 = shalt.err (!%p876_p7)
}
  0x49   : > { %s880_s9 = scalar_lea.vmem %s1158_s1, 512  ;;  %s1000_s27 = smov [#allocation2]  }
  0x4a   : > { %p881_p6 = scmp.ne.s32.totalorder %s1158_s1, %s880_s9  ;;  %s885_s26 = sshll.u32 %s1000_s27, 4  ;;  %s886_s26 = int_to_ptr.vmem [resolvable:$false] %s885_s26 }
  0x4b   : > { %s887_s25 = scalar_lea.vmem %s886_s26, 1024  ;;  %p888_p0 = scmp.lt.s32.totalorder %s1158_s1, %s886_s26 }
  0x4c   : > { %p883_p9 = pnand %p881_p6, %p1117_p2  ;;  %p889_p11 = scmp.lt.s32.totalorder %s887_s25, %s880_s9 }
  0x4e   : > { %p884_p12 = pneg %p883_p9  ;;  %p890_p8 = por %p889_p11, %p888_p0 }
  0x50   : > { %p891_p10 = pnand %p890_p8, %p884_p12 }
  0x52   : > { %894 = shalt.err (!%p891_p10)
}
  0x53   : > { %s1001_s17 = smov 256   ;;  %s1002_s10 = smov 16  }
  0x54   : > { %778 = dma.hbm_to_vmem [thread:$0]  (!%p1096_p13), %s1156_s14, 512, %s1158_s1, %s199_s15, %s1001_s17, %s1001_s17, %s1002_s10  }
  0x55   : > { %s714_s8 = sshll.u32 %s995_s21, 11  ;;  %s250_s26 = scalar_lea.vmem [#allocation7], %s697_s13 }
  0x56   : > { %s1189_s9 = scalar_lea.hbm %s1367_s3, %s714_s8  ;;  %s257_s25 = sshll.u32 %s250_s26, 4  ;;  %s1193_s25 = int_to_ptr.vmem [resolvable:$true] %s257_s25 }
  0x57   : > { %s895_s0 = scalar_lea.hbm %s1189_s9, 2048  ;;  %s900_s15 = scalar_lea.hbm %s1367_s3, 4096 }
  0x58   : > { %p896_p11 = scmp.ne.s32.totalorder %s1189_s9, %s895_s0  ;;  %p901_p3 = scmp.lt.u32.totalorder %s1189_s9, %s1367_s3 }
  0x59   : > { %p902_p5 = scmp.lt.u32.totalorder %s900_s15, %s895_s0  ;;  %p904_p6 = scmp.lt.u32.totalorder %s895_s0, %s1189_s9 }
  0x5a   : > { %p898_p4 = pnand %p896_p11, %p1117_p2 }
  0x5b   : > { %p903_p7 = por %p902_p5, %p901_p3 }
  0x5c   : > { %p899_p1 = pneg %p898_p4 }
  0x5d   : > { %p905_p9 = por %p904_p6, %p903_p7 }
  0x5f   : > { %p906_p12 = pnand %p905_p9, %p899_p1 }
  0x61   : > { %909 = shalt.err (!%p906_p12)
}
  0x62   : > { %s910_s6 = scalar_lea.vmem %s1193_s25, 2048  ;;  %s1003_s13 = smov [#allocation7]  }
  0x63   : > { %p911_p0 = scmp.ne.s32.totalorder %s1193_s25, %s910_s6  ;;  %s915_s8 = sshll.u32 %s1003_s13, 4  ;;  %s916_s8 = int_to_ptr.vmem [resolvable:$false] %s915_s8 }
  0x64   : > { %s917_s12 = scalar_lea.vmem %s916_s8, 4096  ;;  %p918_p11 = scmp.lt.s32.totalorder %s1193_s25, %s916_s8 }
  0x65   : > { %p913_p8 = pnand %p911_p0, %p1117_p2  ;;  %p919_p4 = scmp.lt.s32.totalorder %s917_s12, %s910_s6 }
  0x67   : > { %p914_p10 = pneg %p913_p8  ;;  %p920_p3 = por %p919_p4, %p918_p11 }
  0x69   : > { %p921_p5 = pnand %p920_p3, %p914_p10 }
  0x6b   : > { %924 = shalt.err (!%p921_p5)
}
  0x6c   : > { %s1386_s0 = smov 8   ;;  %s1387_s27 = smov 128  }
  0x6d   : > { %784 = dma.hbm_to_vmem [thread:$0]  (!%p1096_p13), %s1189_s9, 2048, %s1193_s25, %s1111_s16, %s1387_s27, %s1387_s27, %s1386_s0  }
  0x6e   : > { %p1388_p2 = scmp.ne.s32.totalorder %s1384_s11, 0 }
  0x6f   : > { %s1223_s23 = sand.u32 (!%p1388_p2), 1, %s987_s19   ;;  %p1389_p1 = scmp.ne.s32.totalorder (!%p1388_p2), %s1377_s28, 0 }
  0x70   : > { %275 = sbr.rel (%p1388_p2) target bundleno = 773 (0x305), region = 40  ;;  %s701_s26 = sshll.u32 (!%p1388_p2), %s1223_s23, 5 }
  0x71   : > { %s278_s1 = scalar_lea.sflag (!%p1388_p2), [#allocation3], %s1223_s23  ;;  %s1227_s14 = scalar_lea.vmem (!%p1388_p2), [#allocation2], %s701_s26 }
  0x77   : > { %970 = dma.done.wait (%p1389_p1), %s278_s1, 512  }
  0x78   : > { %972 = vsyncadd (%p1389_p1), %s278_s1, 4294966784  ;;  %s286_s7 = sand.u32 1, %s1060_s22   ;;  %s702_s16 = sshll.u32 %s1223_s23, 8 }
  0x79   : > { %s287_s11 = scalar_lea.sflag [#allocation6], %s286_s7  ;;  %s1235_s9 = scalar_lea.vmem [#allocation5], %s702_s16 }
  0x7a   : > { %974 = dma.done.wait (%p1389_p1), %s287_s11, 6144  }
  0x7b   : > { %976 = vsyncadd (%p1389_p1), %s287_s11, 4294961152  ;;  %v1004_v0 = vmov 0.0   ;;  %v369_v1 = vld [vmem:[%s1235_s9 + $0x80] sm:$0xff]  ;;  %v370_v2 = vld [vmem:[%s1235_s9 + $0x88] sm:$0xff]  ;;  %s703_s28 = sshll.u32 %s1223_s23, 7  ;;  %vm1005_vm0 = vmmov 0  }
  0x7c   : > { %747 = vmatprep.subr.bf16.mxu1 %v1004_v0  ;;  %v353_v3 = vld [vmem:[%s1235_s9] sm:$0xff]  ;;  %v413_v4 = vpack.c.bf16 %v370_v2, %v369_v1  ;;  %v354_v5 = vld [vmem:[%s1235_s9 + $0x8] sm:$0xff]  ;;  %v371_v6 = vld [vmem:[%s1235_s9 + $0x90] sm:$0xff]  ;;  %s1263_s25 = scalar_lea.vmem [#allocation7], %s703_s28  ;;  %763 = vmatprep.mubr.msk.bf16.mxu1 %vm1005_vm0, %v1004_v0  ;;  %p342_p13 = scmp.lt.s32.totalorder %s1060_s22, 1 }
  0x7d   : > { %v372_v7 = vld [vmem:[%s1235_s9 + $0x98] sm:$0xff]  ;;  %v405_v8 = vpack.c.bf16 %v354_v5, %v353_v3  ;;  %v355_v10 = vld [vmem:[%s1235_s9 + $0x10] sm:$0xff]  ;;  %v373_v12 = vld [vmem:[%s1235_s9 + $0xa0] sm:$0xff]  ;;  %s704_s0 = sshll.u32 %s1223_s23, 4  ;;  %s715_s27 = sshll.u32 %s1060_s22, 8 }
  0x7e   : > { %v414_v9 = vpack.c.bf16 %v372_v7, %v371_v6  ;;  %v356_v11 = vld [vmem:[%s1235_s9 + $0x18] sm:$0xff]  ;;  %716 = vmatprep.subr.bf16.mxu0 %v413_v4  ;;  %v374_v13 = vld [vmem:[%s1235_s9 + $0xa8] sm:$0xff]  ;;  %v357_v16 = vld [vmem:[%s1235_s9 + $0x20] sm:$0xff]  ;;  %s343_s15 = scalar_select %p342_p13, %s1060_s22, 1 }
  0x7f   : > { %717 = vmatpush3.bf16.msra.mxu0 %v405_v8  ;;  %v406_v14 = vpack.c.bf16 %v356_v11, %v355_v10  ;;  %v415_v15 = vpack.c.bf16 %v374_v13, %v373_v12  ;;  %v358_v17 = vld [vmem:[%s1235_s9 + $0x28] sm:$0xff]  ;;  %v375_v18 = vld [vmem:[%s1235_s9 + $0xb0] sm:$0xff]  ;;  %v376_v19 = vld [vmem:[%s1235_s9 + $0xb8] sm:$0xff]  ;;  %s341_s26 = scalar_lea.vmem [#allocation8], %s704_s0  ;;  %s1318_s16 = scalar_lea.hbm %s1369_s5, %s715_s27 }
  0x80   : > { %718 = vmatprep.subr.bf16.mxu0 %v414_v9  ;;  %v407_v20 = vpack.c.bf16 %v358_v17, %v357_v16  ;;  %v416_v21 = vpack.c.bf16 %v376_v19, %v375_v18  ;;  %v359_v22 = vld [vmem:[%s1235_s9 + $0x30] sm:$0xff]  ;;  %v360_v23 = vld [vmem:[%s1235_s9 + $0x38] sm:$0xff]  ;;  %v377_v24 = vld [vmem:[%s1235_s9 + $0xc0] sm:$0xff]  ;;  %s344_s6 = scalar_lea.vmem %s1366_s2, %s343_s15  ;;  %s347_s12 = scalar_lea.vmem %s1368_s4, %s343_s15 }
  0x81   : > { %v378_v25 = vld [vmem:[%s1235_s9 + $0xc8] sm:$0xff]  ;;  %v352_v27 = vld [vmem:[%s1227_s14 + $0x18] sm:$0xff]  ;;  %v408_v28 = vpack.c.bf16 %v360_v23, %v359_v22  ;;  %v386_v30 = vld [vmem:[%s1263_s25] sm:$0xff]  ;;  %s554_s1 = sshll.u32 %s341_s26, 4  ;;  %s541_s11 = scalar_lea.sflag [#allocation4], %s1223_s23  ;;  %s1320_s1 = int_to_ptr.vmem [resolvable:$true] %s554_s1 }
  0x82   : > { %v350_v26 = vld [vmem:[%s1227_s14 + $0x8] sm:$0xff]  ;;  %v388_v32 = vld [vmem:[%s1263_s25 + $0x10] sm:$0xff]  ;;  %v417_v33 = vpack.c.bf16 %v378_v25, %v377_v24  ;;  %v361_v34 = vld [vmem:[%s1235_s9 + $0x40] sm:$0xff]  ;;  %p1390_p6 = scmp.ne.s32.totalorder %s1378_s29, 0  ;;  %s1006_s22 = smov [#allocation8]  }
  0x83   : > { %719 = vmatpush3.bf16.msra.mxu0 %v406_v14  ;;  %v404_v29 = vpack.c.bf16 %v352_v27, %v350_v26  ;;  %v387_v31 = vld [vmem:[%s1263_s25 + $0x8] sm:$0xff]  ;;  %v389_v37 = vld [vmem:[%s1263_s25 + $0x18] sm:$0xff]  ;;  %v379_v38 = vld [vmem:[%s1235_s9 + $0xd0] sm:$0xff]  ;;  %s929_s28 = sshll.u32 %s1006_s22, 4  ;;  %s930_s28 = int_to_ptr.vmem [resolvable:$false] %s929_s28 }
  0x84   : > { %720 = vmatprep.subr.bf16.mxu0 %v415_v15  ;;  %v362_v35 = vld [vmem:[%s1235_s9 + $0x48] sm:$0xff]  ;;  %v471_v36 = vpack.c.bf16 %v387_v31, %v386_v30  ;;  %v380_v39 = vld [vmem:[%s1235_s9 + $0xd8] sm:$0xff]  ;;  %v472_v40 = vpack.c.bf16 %v389_v37, %v388_v32  ;;  %v390_v42 = vld [vmem:[%s1263_s25 + $0x20] sm:$0xff]  ;;  %p932_p0 = scmp.lt.s32.totalorder %s1320_s1, %s930_s28 }
  0x85   : > { %459 = vmatprep.mubr.bf16.mxu0 %v404_v29  ;;  %v409_v41 = vpack.c.bf16 %v362_v35, %v361_v34  ;;  %v391_v43 = vld [vmem:[%s1263_s25 + $0x28] sm:$0xff]  ;;  %v418_v44 = vpack.c.bf16 %v380_v39, %v379_v38  ;;  %v363_v45 = vld [vmem:[%s1235_s9 + $0x50] sm:$0xff]  ;;  %v364_v46 = vld [vmem:[%s1235_s9 + $0x58] sm:$0xff] }
  0x86   : > { %748 = vmatpush3.bf16.msra.mxu1 %v471_v36  ;;  %v381_v47 = vld [vmem:[%s1235_s9 + $0xe0] sm:$0xff]  ;;  %v382_v48 = vld [vmem:[%s1235_s9 + $0xe8] sm:$0xff]  ;;  %v473_v49 = vpack.c.bf16 %v391_v43, %v390_v42  ;;  %v410_v50 = vpack.c.bf16 %v364_v46, %v363_v45  ;;  %v392_v51 = vld [vmem:[%s1263_s25 + $0x30] sm:$0xff] }
  0x87   : > { %721 = vmatpush3.bf16.msra.mxu0 %v407_v20  ;;  %749 = vmatprep.subr.bf16.mxu1 %v1004_v0  ;;  %v393_v52 = vld [vmem:[%s1263_s25 + $0x38] sm:$0xff]  ;;  %v419_v53 = vpack.c.bf16 %v382_v48, %v381_v47  ;;  %v365_v54 = vld [vmem:[%s1235_s9 + $0x60] sm:$0xff]  ;;  %v366_v55 = vld [vmem:[%s1235_s9 + $0x68] sm:$0xff] }
  0x88   : > { %722 = vmatprep.subr.bf16.mxu0 %v416_v21  ;;  %v383_v56 = vld [vmem:[%s1235_s9 + $0xf0] sm:$0xff]  ;;  %v384_v57 = vld [vmem:[%s1235_s9 + $0xf8] sm:$0xff]  ;;  %v474_v58 = vpack.c.bf16 %v393_v52, %v392_v51  ;;  %v411_v59 = vpack.c.bf16 %v366_v55, %v365_v54  ;;  %v394_v60 = vld [vmem:[%s1263_s25 + $0x40] sm:$0xff] }
  0x89   : > { %v395_v61 = vld [vmem:[%s1263_s25 + $0x48] sm:$0xff]  ;;  %v420_v62 = vpack.c.bf16 %v384_v57, %v383_v56  ;;  %v367_v63 = vld [vmem:[%s1235_s9 + $0x70] sm:$0xff]  ;;  %v368_v1 = vld [vmem:[%s1235_s9 + $0x78] sm:$0xff]  ;;  %s925_s9 = scalar_lea.vmem %s1320_s1, 256 }
  0x8a   : > { %750 = vmatpush3.bf16.msra.mxu1 %v472_v40  ;;  %v475_v2 = vpack.c.bf16 %v395_v61, %v394_v60  ;;  %v412_v3 = vpack.c.bf16 %v368_v1, %v367_v63  ;;  %v349_v4 = vld [vmem:[%s1227_s14] sm:$0xff]  ;;  %v351_v5 = vld [vmem:[%s1227_s14 + $0x10] sm:$0xff]  ;;  %v397_v8 = vld [vmem:[%s1263_s25 + $0x58] sm:$0xff]  ;;  %p926_p7 = scmp.ne.s32.totalorder %s1320_s1, %s925_s9 }
  0x8b   : > { %723 = vmatpush3.bf16.msra.mxu0 %v408_v28  ;;  %751 = vmatprep.subr.bf16.mxu1 %v1004_v0  ;;  %v403_v6 = vpack.c.bf16 %v351_v5, %v349_v4  ;;  %v396_v7 = vld [vmem:[%s1263_s25 + $0x50] sm:$0xff]  ;;  %v398_v10 = vld [vmem:[%s1263_s25 + $0x60] sm:$0xff]  ;;  %v399_v11 = vld [vmem:[%s1263_s25 + $0x68] sm:$0xff] }
  0x8c   : > { %724 = vmatprep.subr.bf16.mxu0 %v417_v33  ;;  %v476_v9 = vpack.c.bf16 %v397_v8, %v396_v7  ;;  %v477_v12 = vpack.c.bf16 %v399_v11, %v398_v10  ;;  %v400_v13 = vld [vmem:[%s1263_s25 + $0x70] sm:$0xff]  ;;  %v401_v14 = vld [vmem:[%s1263_s25 + $0x78] sm:$0xff]  ;;  %v705_v17 = vld [vmem:[%s344_s6] ss:$0 sm:$0xff]  ;;  %p927_p9 = pnand %p926_p7, %p1390_p6  ;;  %s931_s25 = scalar_lea.vmem %s930_s28, 512 }
  0x8d   : > { %v478_v15 = vpack.c.bf16 %v401_v14, %v400_v13  ;;  %p933_p8 = scmp.lt.s32.totalorder %s931_s25, %s925_s9 }
  0x8e   : > { %752 = vmatpush3.bf16.msra.mxu1 %v473_v49  ;;  %p928_p12 = pneg %p927_p9 }
  0x8f   : > { %725 = vmatpush3.bf16.msra.mxu0 %v409_v41  ;;  %753 = vmatprep.subr.bf16.mxu1 %v1004_v0  ;;  %p934_p10 = por %p933_p8, %p932_p0 }
  0x90   : > { %726 = vmatprep.subr.bf16.mxu0 %v418_v44 }
  0x91   : > { %p935_p11 = pnand %p934_p10, %p928_p12 }
  0x92   : > { %754 = vmatpush3.bf16.msra.mxu1 %v474_v58 }
  0x93   : > { %727 = vmatpush3.bf16.msra.mxu0 %v410_v50  ;;  %755 = vmatprep.subr.bf16.mxu1 %v1004_v0 }
  0x94   : > { %728 = vmatprep.subr.bf16.mxu0 %v419_v53 }
  0x96   : > { %756 = vmatpush3.bf16.msra.mxu1 %v475_v2 }
  0x97   : > { %729 = vmatpush3.bf16.msra.mxu0 %v411_v59  ;;  %757 = vmatprep.subr.bf16.mxu1 %v1004_v0 }
  0x98   : > { %730 = vmatprep.subr.bf16.mxu0 %v420_v62 }
  0x9a   : > { %758 = vmatpush3.bf16.msra.mxu1 %v476_v9 }
  0x9b   : > { %731 = vmatpush3.bf16.msra.mxu0 %v412_v3  ;;  %759 = vmatprep.subr.bf16.mxu1 %v1004_v0 }
  0x9e   : > { %460 = vmatmul.mubr.bf16.vlgmr.msra.gmra.mrb[0].mxu0 %v403_v6  ;;  %760 = vmatpush3.bf16.msra.mxu1 %v477_v12 }
  0x9f   : > { %761 = vmatprep.subr.bf16.mxu1 %v1004_v0  ;;  %v706_v0 = vld [vmem:[%s347_s12] ss:$0 sm:$0xff] }
  0xa2   : > { %762 = vmatpush3.bf16.msra.mxu1 %v478_v15 }
 0x171   : > { %v732_v16 = vpop.f32.mrb[0].mxu0 }
 0x172   : > { %v733_v18 = vpop.f32.mrb[1].mxu0 }
 0x173   : > { %v734_v19 = vadd.f32 %v733_v18, %v732_v16  ;;  %v735_v20 = vpop.f32.mrb[2].mxu0 }
 0x174   : > { %v736_v21 = vpop.f32.mrb[3].mxu0 }
 0x175   : > { %v462_v22 = vadd.f32 %v734_v19, %v705_v17  ;;  %v737_v23 = vadd.f32 %v736_v21, %v735_v20 }
 0x177   : > { %v465_v24 = vadd.f32 %v737_v23, %v705_v17  ;;  %v468_v25 = vmax.f32 %v462_v22, 0.0 }
 0x179   : > { %v469_v26 = vmax.f32 %v465_v24, 0.0 }
 0x17b   : > { %v470_v27 = vpack.c.bf16 %v469_v26, %v468_v25 }
 0x17d   : > { %764 = vmatmul.mubr.bf16.vlgmr.msra.gmra.mrb[0].mxu1 %v470_v27 }
 0x250   : > { %v519_v28 = vpop.f32.mrb[0].mxu1 }
 0x251   : > { %v520_v29 = vadd.f32 %v706_v0, %v519_v28  ;;  %v765_v30 = vpop.f32.mrb[1].mxu1 }
 0x252   : > { %v522_v31 = vpop.f32.mrb[2].mxu1 }
 0x253   : > { %v523_v32 = vadd.f32 %v706_v0, %v522_v31  ;;  %v766_v33 = vpop.f32.mrb[3].mxu1  ;;  %v526_v34 = vmul.f32 %v520_v29, %v520_v29 }
 0x255   : > { %528 = vadd.xlane.f32.xlu0 %v526_v34  ;;  %v527_v35 = vmul.f32 %v523_v32, %v523_v32 }
 0x259   : > { %530 = vadd.xlane.f32.xlu0 %v527_v35 }
 0x2e2   : > { %v529_v36 = vpop.xlane.xlu0 %528 }
 0x2e3   : > { %v532_v37 = vadd.f32 1e-12, %v529_v36 }
 0x2e5   : > { %831 = vrsqrt.f32 %v532_v37 }
 0x2e6   : > { %v531_v38 = vpop.xlane.xlu0 %530 }
 0x2e7   : > { %v533_v39 = vadd.f32 1e-12, %v531_v38 }
 0x2e9   : > { %833 = vrsqrt.f32 %v533_v39 }
 0x2ef   : > { %v832_v40 = vpop.eup %831 }
 0x2f0   : > { %v536_v41 = vmul.f32 %v832_v40, %v520_v29 }
 0x2f2   : > { %538 = vst [vmem:[%s341_s26] sm:$0xff] %v536_v41 }
 0x2f3   : > { %v834_v42 = vpop.eup %833 }
 0x2f4   : > { %v537_v43 = vmul.f32 %v834_v42, %v523_v32 }
 0x2f6   : > { %539 = vst [vmem:[%s341_s26 + $0x8] sm:$0xff] %v537_v43 }
 0x2f7   : > { %938 = shalt.err (!%p935_p11)
}
 0x2f8   : > { %s939_s15 = scalar_lea.hbm %s1318_s16, 256  ;;  %s943_s6 = scalar_lea.hbm %s1369_s5, 512 }
 0x2f9   : > { %p940_p4 = scmp.ne.s32.totalorder %s1318_s16, %s939_s15  ;;  %p944_p2 = scmp.lt.u32.totalorder %s1318_s16, %s1369_s5 }
 0x2fa   : > { %p945_p1 = scmp.lt.u32.totalorder %s943_s6, %s939_s15  ;;  %p947_p7 = scmp.lt.u32.totalorder %s939_s15, %s1318_s16 }
 0x2fb   : > { %p941_p3 = pnand %p940_p4, %p1390_p6 }
 0x2fc   : > { %p946_p13 = por %p945_p1, %p944_p2 }
 0x2fd   : > { %p942_p5 = pneg %p941_p3 }
 0x2fe   : > { %p948_p9 = por %p947_p7, %p946_p13 }
 0x300   : > { %p949_p12 = pnand %p948_p9, %p942_p5 }
 0x302   : > { %952 = shalt.err (!%p949_p12)
}
 0x303   : > { %s1007_s12 = smov 128   ;;  %s1008_s0 = smov 8  }
 0x304   : > { %773 = dma.vmem_to_hbm [thread:$0]  (%p1390_p6), %s1320_s1, 256, %s1318_s16, %s541_s11, %s1007_s12, %s1007_s12, %s1008_s0  }
 0x305 PF: > { %s569_s27 = sand.u32 1, %s983_s18   ;;  %p1391_p0 = scmp.ne.s32.totalorder %s1379_s30, 0 }
 0x306   : > { %p1392_p8 = scmp.ge.s32.totalorder %s995_s21, 2  ;;  %s570_s26 = scalar_lea.sflag [#allocation4], %s569_s27 }
 0x308   : > { %p786_p10 = pnand %p1392_p8, %p1391_p0 }
 0x30a   : > { %978 = dma.done.wait (!%p786_p10), %s570_s26, 256  }
 0x30b   : > { %980 = vsyncadd (!%p786_p10), %s570_s26, 4294967040  ;;  %s1393_s14 = sld [smem:[#allocation12_spill]]  ;;  %p21_p11 = scmp.ge.s32.totalorder %s1064_s24, 4  }
 0x30c   : > { %s1394_s18 = smov %s987_s19  ;;  %s1395_s19 = smov %s991_s20 }
 0x30d   : > { %s1397_s21 = smov %s1064_s24  ;;  %23 = sbr.rel (!%p21_p11) target bundleno = 10 (0xa), region = 115 }
 0x311   : > { %s1396_s20 = smov %s1393_s14 }
 0x314   :  { %575 = vsyncpa [#allocation3], 1 }
 0x315   :  { %577 = vsyncpa [#allocation3 + $0x1], 1 }
 0x316   :  { %578 = vsyncpa [#allocation6], 1 }
 0x317   :  { %580 = vsyncpa [#allocation6 + $0x1], 1 }
 0x318   :  { %581 = vsyncpa [#allocation4], 1 }
 0x319   :  { %583 = vsyncpa [#allocation4 + $0x1], 1 }

</bundles_post_ra>
